<compile_context>
chip_gen: v7x
topology: tpu7x:2x2x1
jax: 0.10.0
libtpu: 0.0.40
codegen_flags: <defaults>
</compile_context>

<pallas_src>
import functools

import jax
import jax.numpy as jnp
import numpy as np
from jax.experimental import pallas as pl
from jax.experimental.pallas import tpu as pltpu


def _round_up(x, m):
    return (x + m - 1) // m * m


def _adaptive_input_gather_kernel(ids_ref, tbl_ref, out_ref, buf_ref, sem):
    """One grid step gathers `tn` embedding rows from the HBM table.

    ids_ref : SMEM (N_pad,) int32           -- scalar-prefetched token ids
    tbl_ref : HBM  (n_rows, D) float32      -- concatenated head+tail(+zero) table
    out_ref : VMEM (tn, D) float32          -- output tile for this grid step
    buf_ref : VMEM (tn, D) float32 scratch  -- DMA landing buffer
    sem     : scalar DMA semaphore shared by all row copies of this step
    """
    tn = out_ref.shape[0]
    base = pl.program_id(0) * tn

    # Issue all row copies for this tile; they are all concurrently in flight.
    @pl.loop(0, tn)
    def _issue(i):
        row = ids_ref[base + i]
        pltpu.make_async_copy(
            tbl_ref.at[pl.ds(row, 1), :], buf_ref.at[pl.ds(i, 1), :], sem
        ).start()

    # Wait for each copy. All copies have identical size, so per-copy waits on
    # the shared semaphore account for exactly what was signalled.
    @pl.loop(0, tn)
    def _wait(i):
        row = ids_ref[base + i]
        pltpu.make_async_copy(
            tbl_ref.at[pl.ds(row, 1), :], buf_ref.at[pl.ds(i, 1), :], sem
        ).wait()

    out_ref[...] = buf_ref[...]


def adaptive_input_forward(x_ids, head_w, tail_ws, cutoffs, n_classes, *, tn=256):
    """x_ids: [B, T] int; head_w: [cutoffs[0], D]; tail_ws: list of [osz_i, D]."""
    B, T = x_ids.shape
    D = head_w.shape[1]
    N = B * T

    # Concatenated table: row index == global class id (head rows first, then
    # each tail cluster in order), since local index = id - low for cluster i
    # whose rows start at offset cutoff[i] in the concatenation.
    tables = [head_w.astype(jnp.float32)] + [t.astype(jnp.float32) for t in tail_ws]
    full_table = jnp.concatenate(tables, axis=0)
    total_rows = full_table.shape[0]
    assert total_rows == n_classes, "table sizes must cover [0, n_classes)"

    # Extra all-zero row: ids outside [0, n_classes) map here, matching the
    # reference module (those output rows stay zero). Also keeps every DMA
    # source index in bounds.
    full_table = jnp.concatenate([full_table, jnp.zeros((1, D), jnp.float32)], axis=0)
    zero_row = total_rows

    ids = x_ids.reshape(N).astype(jnp.int32)
    ids = jnp.where((ids >= 0) & (ids < n_classes), ids, zero_row)

    # Token tile: default 256 (fills MXU-free gather tiles & amortizes per-step
    # overhead); shrink for tiny problems so we don't pad excessively.
    tn = min(tn, _round_up(N, 8))
    n_pad = _round_up(N, tn)
    if n_pad != N:
        ids = jnp.concatenate(
            [ids, jnp.full((n_pad - N,), zero_row, dtype=jnp.int32)]
        )

    out = pl.pallas_call(
        _adaptive_input_gather_kernel,
        out_shape=jax.ShapeDtypeStruct((n_pad, D), jnp.float32),
        grid_spec=pltpu.PrefetchScalarGridSpec(
            num_scalar_prefetch=1,                      # ids -> SMEM
            grid=(n_pad // tn,),
            in_specs=[pl.BlockSpec(memory_space=pl.ANY)],   # table stays in HBM
            out_specs=pl.BlockSpec((tn, D), lambda i, ids_ref: (i, 0)),
            scratch_shapes=[
                pltpu.VMEM((tn, D), jnp.float32),
                pltpu.SemaphoreType.DMA(()),
            ],
        ),
        compiler_params=pltpu.CompilerParams(
            dimension_semantics=("parallel",)),
    )(ids, full_table)

    return out[:N].reshape(B, T, D)


if __name__ == "__main__":
    # Small synthetic configuration consistent with the module.
    d_model = 32
    n_classes = 64
    cutoffs = [16, 32]          # head covers [0,16), tail0 [16,32), tail1 [32,64)
    B, T = 2, 8

    key = jax.random.PRNGKey(0)
    k_head, k_t0, k_t1, k_ids = jax.random.split(key, 4)

    # nn.Embedding default init: N(0, 1)
    head_w = jax.random.normal(k_head, (cutoffs[0], d_model), dtype=jnp.float32)
    tail0_w = jax.random.normal(k_t0, (cutoffs[1] - cutoffs[0], d_model), dtype=jnp.float32)
    tail1_w = jax.random.normal(k_t1, (n_classes - cutoffs[1], d_model), dtype=jnp.float32)
    tail_ws = [tail0_w, tail1_w]

    x_ids = jax.random.randint(k_ids, (B, T), 0, n_classes, dtype=jnp.int32)

    out = adaptive_input_forward(x_ids, head_w, tail_ws, cutoffs, n_classes)
    out = jax.block_until_ready(out)

    # Pure-JAX reference: concatenated table lookup (identical semantics).
    full_table = jnp.concatenate([head_w] + tail_ws, axis=0)
    ref = jnp.take(full_table, x_ids.reshape(-1), axis=0).reshape(B, T, d_model)
    np.testing.assert_allclose(np.asarray(out), np.asarray(ref), rtol=1e-6, atol=1e-6)

    assert out.shape == (B, T, d_model) and out.dtype == jnp.float32
    print("KERNEL_OK")
</pallas_src>

<mosaic_0001>
module attributes {stable_mosaic.version = 11 : i64} {
  func.func @_adaptive_input_gather_kernel(%arg0: i32, %arg1: memref<16xi32, #tpu.memory_space<smem>>, %arg2: memref<65x32xf32, #tpu.memory_space<any>>, %arg3: memref<16x32xf32, #tpu.memory_space<vmem>>, %arg4: memref<16x32xf32, #tpu.memory_space<vmem>>, %arg5: memref<!tpu.dma_semaphore, #tpu.memory_space<semaphore_mem>>) attributes {dimension_semantics = [#tpu.dimension_semantics<parallel>], iteration_bounds = array<i64: 1>, scalar_prefetch = 1 : i64, scratch_operands = 2 : i64, tpu.core_type = #tpu.core_type<tc>, window_params = [{}, {transform_indices = @transform_1, window_bounds = array<i64: 16, 32>}]} {
    %c16_i32 = arith.constant 16 : i32
    %0 = arith.muli %arg0, %c16_i32 : i32
    %c0_i32 = arith.constant 0 : i32
    %c16_i32_0 = arith.constant 16 : i32
    %1 = arith.addi %c0_i32, %c16_i32_0 : i32
    %c1_i32 = arith.constant 1 : i32
    scf.for %arg6 = %c0_i32 to %1 step %c1_i32  : i32 {
      %c1_i32_9 = arith.constant 1 : i32
      %5 = arith.muli %arg6, %c1_i32_9 : i32
      %c0_i32_10 = arith.constant 0 : i32
      %6 = arith.addi %c0_i32_10, %5 : i32
      %7 = arith.addi %0, %6 : i32
      %8 = arith.index_cast %7 : i32 to index
      %9 = memref.load %arg1[%8] : memref<16xi32, #tpu.memory_space<smem>>
      %c0_i32_11 = arith.constant 0 : i32
      %10 = tpu.memref_slice %arg2[%9, %c0_i32_11] : memref<65x32xf32, #tpu.memory_space<any>> -> memref<1x32xf32, #tpu.memory_space<any>>
      %c0_i32_12 = arith.constant 0 : i32
      %11 = tpu.memref_slice %arg4[%6, %c0_i32_12] : memref<16x32xf32, #tpu.memory_space<vmem>> -> memref<1x32xf32, #tpu.memory_space<vmem>>
      tpu.enqueue_dma source(%10 : memref<1x32xf32, #tpu.memory_space<any>>) target(%11 : memref<1x32xf32, #tpu.memory_space<vmem>>) target_semaphore(%arg5 : memref<!tpu.dma_semaphore, #tpu.memory_space<semaphore_mem>>)
    }
    %c16_i32_1 = arith.constant 16 : i32
    %c0_i32_2 = arith.constant 0 : i32
    %c16_i32_3 = arith.constant 16 : i32
    %2 = arith.addi %c0_i32_2, %c16_i32_3 : i32
    %c1_i32_4 = arith.constant 1 : i32
    scf.for %arg6 = %c0_i32_2 to %2 step %c1_i32_4  : i32 {
      %c1_i32_9 = arith.constant 1 : i32
      %5 = arith.muli %arg6, %c1_i32_9 : i32
      %c0_i32_10 = arith.constant 0 : i32
      %6 = arith.addi %c0_i32_10, %5 : i32
      %7 = arith.addi %0, %6 : i32
      %8 = arith.index_cast %7 : i32 to index
      %9 = memref.load %arg1[%8] : memref<16xi32, #tpu.memory_space<smem>>
      %c0_i32_11 = arith.constant 0 : i32
      %10 = tpu.memref_slice %arg2[%9, %c0_i32_11] : memref<65x32xf32, #tpu.memory_space<any>> -> memref<1x32xf32, #tpu.memory_space<any>>
      %c0_i32_12 = arith.constant 0 : i32
      %11 = tpu.memref_slice %arg4[%6, %c0_i32_12] : memref<16x32xf32, #tpu.memory_space<vmem>> -> memref<1x32xf32, #tpu.memory_space<vmem>>
      tpu.wait_dma2 semaphore(%arg5 : memref<!tpu.dma_semaphore, #tpu.memory_space<semaphore_mem>>) src(%10 : memref<1x32xf32, #tpu.memory_space<any>>) dst(%11 : memref<1x32xf32, #tpu.memory_space<vmem>>)
    }
    %c16_i32_5 = arith.constant 16 : i32
    %c0 = arith.constant 0 : index
    %c0_6 = arith.constant 0 : index
    %3 = vector.load %arg4[%c0, %c0_6] : memref<16x32xf32, #tpu.memory_space<vmem>>, vector<16x32xf32>
    %c0_7 = arith.constant 0 : index
    %c0_8 = arith.constant 0 : index
    %4 = vector.load %arg3[%c0_7, %c0_8] : memref<16x32xf32, #tpu.memory_space<vmem>>, vector<16x32xf32>
    tpu.vector_store %arg3[%c0_7, %c0_8], %3 {strides = array<i32>} : memref<16x32xf32, #tpu.memory_space<vmem>>, vector<16x32xf32>,
    return
  }
  func.func @transform_1(%arg0: i32, %arg1: memref<16xi32, #tpu.memory_space<smem>>) -> (i32, i32) {
    %c0_i32 = arith.constant 0 : i32
    %c0_i32_0 = arith.constant 0 : i32
    return %arg0, %c0_i32 : i32, i32
  }
}

</mosaic_0001>

<bundles_post_ra>
// kernel: tpu_custom_call.1
= control target key start
LH: loop header
LB: loop body
LE: loop exit
PB: predicated region body
PF: predicated region fallthrough
CT: control target
= control target key end

     0   :  { %s243_s0 = inlined_call_operand.vmem [shape: s32[16], index: 0, kind: input, shape index: {}]   ;;  %s244_s1 = inlined_call_operand.vmem [shape: f32[65,32], index: 1, kind: input, shape index: {}]   ;;  %s245_s2 = inlined_call_operand.hbm [shape: f32[16,32], index: 2, kind: output, shape index: {}]  }
   0x1   :  { %s7_s11 = sshll.u32 %s243_s0, 4  ;;  %s8_s11 = int_to_ptr.vmem [resolvable:$true] %s7_s11 }
   0x2   :  { %s150_s12 = scalar_lea.vmem %s8_s11, 16  ;;  %p155_p1 = scmp.lt.s32.totalorder %s8_s11, %s8_s11 }
   0x3   :  { %p151_p0 = scmp.ne.s32.totalorder %s8_s11, %s150_s12  ;;  %p156_p2 = scmp.lt.s32.totalorder %s150_s12, %s150_s12 }
   0x5   :  { %p157_p3 = por %p156_p2, %p155_p1 }
   0x7   :  { %p158_p4 = pnand %p157_p3, %p151_p0 }
   0x9   :  { %161 = shalt.err (!%p158_p4)  }
   0xa   :  { %s206_s13 = smov [#allocation5]  }
   0xb   :  { %10 = dma.vmem_to_smem %s8_s11, 16, %s206_s13, [#allocation4] }
   0xc   :  { %192 = dma.done.wait [#allocation4], 16 }
   0xd   :  { %193 = vsyncadd [#allocation4], 4294967280 }
   0xe   :  { %12 = sfence }
   0xf   :  { %13 = vsyncpa [#allocation7], 0  ;;  %s198_s14 = smov 0  }
  0x10 LB: > { %s22_s15 = sld [smem:[#allocation5 + %s200_s14]]  ;;  %s24_s18 = scalar_lea.vmem [#allocation2], %s200_s14  ;;  %s200_s14 = sphi %s198_s14, %s20_s14  }
  0x16   : > { %s23_s17 = scalar_lea.vmem %s244_s1, %s22_s15 }
  0x17   : > { %v42_v0 = vld [vmem:[%s23_s17] sm:$0x1] }
  0x18   : > { %43 = vst [vmem:[%s24_s18] sm:$0x1] %v42_v0 }
  0x19   : > { %68 = vsyncadd [#allocation3], 16  ;;  %s20_s14 = sadd.s32 1, %s200_s14  }
  0x1a   : > { %p17_p5 = scmp.ge.s32.totalorder %s20_s14, 16  }
  0x1b   :  { %s202_s19 = smov (%p17_p5), 0  }
  0x1c   :  { %19 = sbr.rel (!%p17_p5) target bundleno = 16 (0x10), region = 76 }
  0x23 LB: > { %194 = dma.done.wait [#allocation3], 16  ;;  %s204_s19 = sphi %s202_s19, %s74_s19  }
  0x24   : > { %195 = vsyncadd [#allocation3], 4294967280  ;;  %s74_s19 = sadd.s32 1, %s204_s19  }
  0x25   : > { %p71_p6 = scmp.ge.s32.totalorder %s74_s19, 16  }
  0x26   :  { %v80_v1 = vld [vmem:[#allocation2] sm:$0xff] (%p71_p6)  ;;  %vm82_vm0 = vcmask (%p71_p6), 261120   ;;  %v81_v2 = vld [vmem:[#allocation2 + $0x8] sm:$0xff] (%p71_p6)  ;;  %s207_s20 = smov (%p71_p6), [#allocation6]  }
  0x27   :  { %73 = sbr.rel (!%p71_p6) target bundleno = 35 (0x23), region = 87  ;;  %83 = vst.msk [vmem:[#allocation6] sm:$0xff] (%p71_p6), %vm82_vm0, %v80_v1  ;;  %84 = vst.msk [vmem:[#allocation6 + $0x8] sm:$0xff] (%p71_p6), %vm82_vm0, %v81_v2  ;;  %s90_s21 = sshll.u32 (%p71_p6), %s207_s20, 4  ;;  %s91_s21 = int_to_ptr.vmem [resolvable:$true] %s90_s21 }
  0x28   :  { %s162_s22 = scalar_lea.vmem (%p71_p6), %s91_s21, 256  ;;  %p167_p8 = scmp.lt.s32.totalorder (%p71_p6), %s91_s21, %s91_s21 }
  0x29   :  { %p163_p7 = scmp.ne.s32.totalorder (%p71_p6), %s91_s21, %s162_s22  ;;  %p168_p9 = scmp.lt.s32.totalorder (%p71_p6), %s162_s22, %s162_s22 }
  0x2b   :  { %p169_p10 = por (%p71_p6), %p168_p9, %p167_p8 }
  0x2d   :  { %p170_p11 = pnand (%p71_p6), %p169_p10, %p163_p7 }
  0x2f   :  { %173 = shalt.err (!%p170_p11)
}
  0x30   :  { %s174_s24 = scalar_lea.hbm %s245_s2, 256 }
  0x31   :  { %p175_p12 = scmp.ne.s32.totalorder %s245_s2, %s174_s24  ;;  %p178_p13 = scmp.lt.u32.totalorder %s174_s24, %s245_s2 }
  0x33   :  { %p180_p0 = pnand %p178_p13, %p175_p12 }
  0x35   :  { %183 = shalt.err (!%p180_p0)
}
  0x36   :  { %s208_s29 = smov 128   ;;  %s209_s30 = smov 8  }
  0x37   :  { %96 = dma.vmem_to_hbm [thread:$0]  %s91_s21, 256, %s245_s2, [#allocation7], %s208_s29, %s208_s29, %s209_s30  }
  0x38   :  { %196 = dma.done.wait [#allocation7], 256  }
  0x39   :  { %197 = vsyncadd [#allocation7], 4294967040 }
  0x3a   :  { %100 = vsyncpa [#allocation7], 1 }
  0x3b   :  { %101 = vsyncmov [#allocation3] }
  0x3e   :  { %s102_s5 = vpop.sfrf %101 }
  0x3f   :  { %p129_p1 = scmp.ne.s32.totalorder %s102_s5, 0 }
  0x41   :  { %106 = shalt.err (%p129_p1)  }

</bundles_post_ra>
